<compile_context>
chip_gen: v6e
topology: v6e:2x2x1
jax: 0.10.0
libtpu: 0.0.40
codegen_flags: <defaults>
</compile_context>

<pallas_src>
import jax
import jax.numpy as jnp
from jax.experimental import pallas as pl
from jax.experimental.pallas import tpu as pltpu

LN_EPS = 1e-5  # torch.nn.LayerNorm default


def _pre_ln_transition_kernel(x_ref, g_ref, b_ref, w1v_ref, w1g_ref, w2_ref, o_ref):
    # --- LayerNorm over the last dim (per row), f32 statistics ---
    x = x_ref[...].astype(jnp.float32)                        # (tm, D)
    mean = jnp.mean(x, axis=-1, keepdims=True)
    cent = x - mean
    var = jnp.mean(cent * cent, axis=-1, keepdims=True)
    xn = cent * jax.lax.rsqrt(var + LN_EPS)
    xn = xn * g_ref[...] + b_ref[...]                         # affine, (1, D) broadcasts

    # --- Transition: two lane-dense D->Di matmuls (value / gate halves of W1),
    #     SwiGLU in f32, then Di->D.  bf16 MXU operands, f32 accumulation. ---
    xn_bf = xn.astype(jnp.bfloat16)
    val = jnp.dot(xn_bf, w1v_ref[...], preferred_element_type=jnp.float32)    # (tm, Di)
    gates = jnp.dot(xn_bf, w1g_ref[...], preferred_element_type=jnp.float32)  # (tm, Di)
    act = (jax.nn.silu(gates) * val).astype(jnp.bfloat16)                     # (tm, Di)
    out = jnp.dot(act, w2_ref[...], preferred_element_type=jnp.float32)       # (tm, D)

    o_ref[...] = out.astype(o_ref.dtype)


def pre_layernorm_transition(x, ln_gamma, ln_beta, w1, w2, *, tm=256):
    """y = Transition(LayerNorm(x)).

    x:        [B, N, D]  (channels-last)
    ln_gamma: [D], ln_beta: [D]
    w1:       [D, 2*Di]  (torch LinearNoBias(D, 2*Di).weight, transposed)
    w2:       [Di, D]    (torch LinearNoBias(Di, D).weight, transposed)
    tm:       row tile; default 256 (clamped to a multiple of 8 for tiny inputs,
              tail rows padded in the wrapper and trimmed after).
    """
    B, N, D = x.shape
    two_di = w1.shape[1]
    di = w2.shape[0]
    assert two_di == 2 * di, "w1 must be [D, 2*Di] with Di = w2.shape[0]"

    rows = B * N
    # Clamp the tile for small inputs (sublane multiple of 8); pad the tail.
    tm = max(8, min(tm, int(pl.cdiv(rows, 8)) * 8))
    padded_rows = int(pl.cdiv(rows, tm)) * tm
    grid = (padded_rows // tm,)  # v7x: even grid sizes load-balance the 2 TCs

    x2d = x.reshape(rows, D)
    if padded_rows != rows:
        x2d = jnp.pad(x2d, ((0, padded_rows - rows), (0, 0)))

    g2d = ln_gamma.reshape(1, D).astype(jnp.float32)
    b2d = ln_beta.reshape(1, D).astype(jnp.float32)
    # Pre-split W1 into lane-dense value / gate halves; bf16 MXU operands.
    w1_val = w1[:, :di].astype(jnp.bfloat16)     # first chunk  -> value
    w1_gate = w1[:, di:].astype(jnp.bfloat16)    # second chunk -> gates
    w2_bf = w2.astype(jnp.bfloat16)

    def run(single_buffer_weights):
        if single_buffer_weights:
            def resident(shape):
                return pl.BlockSpec(shape, lambda i: (0, 0),
                                    pipeline_mode=pl.Buffered(1))
        else:
            def resident(shape):
                return pl.BlockSpec(shape, lambda i: (0, 0))

        return pl.pallas_call(
            _pre_ln_transition_kernel,
            out_shape=jax.ShapeDtypeStruct((padded_rows, D), x.dtype),
            grid=grid,
            in_specs=[
                pl.BlockSpec((tm, D), lambda i: (i, 0)),   # x rows tile (pipelined)
                resident((1, D)),                          # LN gamma (resident)
                resident((1, D)),                          # LN beta  (resident)
                resident((D, di)),                         # W1 value half (resident)
                resident((D, di)),                         # W1 gate half  (resident)
                resident((di, D)),                         # W2            (resident)
            ],
            out_specs=pl.BlockSpec((tm, D), lambda i: (i, 0)),
            compiler_params=pltpu.CompilerParams(
                dimension_semantics=("parallel",),          # megacore-shard row tiles
                vmem_limit_bytes=64 * 1024 * 1024,          # within v5e/v6e/v7x physical
            ),
        )(x2d, g2d, b2d, w1_val, w1_gate, w2_bf)

    try:
        out2d = run(single_buffer_weights=True)
    except Exception:
        # pl.Buffered(1) unsupported on this jax/libtpu build -> default buffering.
        out2d = run(single_buffer_weights=False)

    return out2d[:rows].reshape(B, N, D)


def _reference(x, ln_gamma, ln_beta, w1, w2):
    """Pure-JAX reference with the same numerics as the kernel
    (f32 LN stats / SwiGLU / accumulation, bf16 MXU operands)."""
    xf = x.astype(jnp.float32)
    mean = jnp.mean(xf, axis=-1, keepdims=True)
    cent = xf - mean
    var = jnp.mean(cent * cent, axis=-1, keepdims=True)
    xn = cent * jax.lax.rsqrt(var + LN_EPS) * ln_gamma + ln_beta
    di = w2.shape[0]
    xn_bf = xn.astype(jnp.bfloat16)
    val = jnp.dot(xn_bf, w1[:, :di].astype(jnp.bfloat16),
                  preferred_element_type=jnp.float32)
    gates = jnp.dot(xn_bf, w1[:, di:].astype(jnp.bfloat16),
                    preferred_element_type=jnp.float32)
    act = (jax.nn.silu(gates) * val).astype(jnp.bfloat16)
    out = jnp.dot(act, w2.astype(jnp.bfloat16),
                  preferred_element_type=jnp.float32)
    return out.astype(x.dtype)


if __name__ == "__main__":
    # Shapes consistent with PairwiseConditioning's
    # PreLayerNorm(Transition(dim=128, expansion_factor=2)): batch=2, seq=8, dim=128.
    # D=128 keeps the kernel's output lane-dense (multiple of 128 lanes).
    B, N, D = 2, 8, 128
    EXPANSION = 2
    DI = D * EXPANSION            # 256

    key = jax.random.PRNGKey(0)
    kx, kw1, kw2 = jax.random.split(key, 3)

    x = jax.random.normal(kx, (B, N, D), dtype=jnp.float32)

    # Deterministic synthetic parameters matching the module's shapes.
    ln_gamma = jnp.ones((D,), jnp.float32)        # nn.LayerNorm default weight
    ln_beta = jnp.zeros((D,), jnp.float32)        # nn.LayerNorm default bias
    # LinearNoBias(D, 2*DI).weight is [2*DI, D] in torch; stored transposed [D, 2*DI].
    w1 = jax.random.normal(kw1, (D, 2 * DI), jnp.float32) * (1.0 / jnp.sqrt(D))
    # LinearNoBias(DI, D).weight is [D, DI] in torch; stored transposed [DI, D].
    w2 = jax.random.normal(kw2, (DI, D), jnp.float32) * (1.0 / jnp.sqrt(DI))

    out = pre_layernorm_transition(x, ln_gamma, ln_beta, w1, w2)
    out = jax.block_until_ready(out)

    ref = _reference(x, ln_gamma, ln_beta, w1, w2)
    assert out.shape == (B, N, D)
    assert jnp.allclose(out, ref, atol=2e-3, rtol=2e-3), "mismatch vs reference"

    print("KERNEL_OK")
</pallas_src>

<mosaic_0001>
module attributes {stable_mosaic.version = 11 : i64} {
  func.func @_pre_ln_transition_kernel(%arg0: i32, %arg1: memref<16x128xf32, #tpu.memory_space<vmem>>, %arg2: memref<1x128xf32, #tpu.memory_space<vmem>>, %arg3: memref<1x128xf32, #tpu.memory_space<vmem>>, %arg4: memref<128x256xbf16, #tpu.memory_space<vmem>>, %arg5: memref<128x256xbf16, #tpu.memory_space<vmem>>, %arg6: memref<256x128xbf16, #tpu.memory_space<vmem>>, %arg7: memref<16x128xf32, #tpu.memory_space<vmem>>) attributes {dimension_semantics = [#tpu.dimension_semantics<parallel>], iteration_bounds = array<i64: 1>, scalar_prefetch = 0 : i64, scratch_operands = 0 : i64, tpu.core_type = #tpu.core_type<tc>, window_params = [{transform_indices = @transform_0, window_bounds = array<i64: 16, 128>}, {pipeline_mode = #tpu.pipeline_mode<synchronous>, transform_indices = @transform_1, window_bounds = array<i64: 1, 128>}, {pipeline_mode = #tpu.pipeline_mode<synchronous>, transform_indices = @transform_2, window_bounds = array<i64: 1, 128>}, {pipeline_mode = #tpu.pipeline_mode<synchronous>, transform_indices = @transform_3, window_bounds = array<i64: 128, 256>}, {pipeline_mode = #tpu.pipeline_mode<synchronous>, transform_indices = @transform_4, window_bounds = array<i64: 128, 256>}, {pipeline_mode = #tpu.pipeline_mode<synchronous>, transform_indices = @transform_5, window_bounds = array<i64: 256, 128>}, {transform_indices = @transform_6, window_bounds = array<i64: 16, 128>}]} {
    %c0 = arith.constant 0 : index
    %c0_0 = arith.constant 0 : index
    %0 = vector.load %arg1[%c0, %c0_0] : memref<16x128xf32, #tpu.memory_space<vmem>>, vector<16x128xf32>
    %cst = arith.constant dense<0.000000e+00> : vector<16xf32>
    %1 = vector.multi_reduction <add>, %0, %cst [1] : vector<16x128xf32> to vector<16xf32>
    %2 = vector.shape_cast %1 : vector<16xf32> to vector<16x1xf32>
    %cst_1 = arith.constant 1.280000e+02 : f32
    %3 = vector.broadcast %cst_1 : f32 to vector<16x1xf32>
    %4 = arith.divf %2, %3 : vector<16x1xf32>
    %5 = vector.broadcast %4 : vector<16x1xf32> to vector<16x128xf32>
    %6 = arith.subf %0, %5 : vector<16x128xf32>
    %7 = arith.mulf %6, %6 : vector<16x128xf32>
    %cst_2 = arith.constant dense<0.000000e+00> : vector<16xf32>
    %8 = vector.multi_reduction <add>, %7, %cst_2 [1] : vector<16x128xf32> to vector<16xf32>
    %9 = vector.shape_cast %8 : vector<16xf32> to vector<16x1xf32>
    %cst_3 = arith.constant 1.280000e+02 : f32
    %10 = vector.broadcast %cst_3 : f32 to vector<16x1xf32>
    %11 = arith.divf %9, %10 : vector<16x1xf32>
    %cst_4 = arith.constant 9.99999974E-6 : f32
    %12 = vector.broadcast %cst_4 : f32 to vector<16x1xf32>
    %13 = arith.addf %11, %12 : vector<16x1xf32>
    %14 = math.rsqrt %13 : vector<16x1xf32>
    %15 = vector.broadcast %14 : vector<16x1xf32> to vector<16x128xf32>
    %16 = arith.mulf %6, %15 : vector<16x128xf32>
    %c0_5 = arith.constant 0 : index
    %c0_6 = arith.constant 0 : index
    %17 = vector.load %arg2[%c0_5, %c0_6] : memref<1x128xf32, #tpu.memory_space<vmem>>, vector<1x128xf32>
    %18 = vector.broadcast %17 : vector<1x128xf32> to vector<16x128xf32>
    %19 = arith.mulf %16, %18 : vector<16x128xf32>
    %c0_7 = arith.constant 0 : index
    %c0_8 = arith.constant 0 : index
    %20 = vector.load %arg3[%c0_7, %c0_8] : memref<1x128xf32, #tpu.memory_space<vmem>>, vector<1x128xf32>
    %21 = vector.broadcast %20 : vector<1x128xf32> to vector<16x128xf32>
    %22 = arith.addf %19, %21 : vector<16x128xf32>
    %23 = arith.truncf %22 : vector<16x128xf32> to vector<16x128xbf16>
    %c0_9 = arith.constant 0 : index
    %c0_10 = arith.constant 0 : index
    %24 = vector.load %arg4[%c0_9, %c0_10] : memref<128x256xbf16, #tpu.memory_space<vmem>>, vector<128x256xbf16>
    %cst_11 = arith.constant dense<0.000000e+00> : vector<16x256xf32>
    %25 = tpu.matmul %23, %24, %cst_11 {dimension_numbers = #tpu.dot_dimension_numbers<[1], [0], [0], [1], [0, 0, 1, 1], [], []>} : vector<16x128xbf16>, vector<128x256xbf16>, vector<16x256xf32> -> vector<16x256xf32>
    %c0_12 = arith.constant 0 : index
    %c0_13 = arith.constant 0 : index
    %26 = vector.load %arg5[%c0_12, %c0_13] : memref<128x256xbf16, #tpu.memory_space<vmem>>, vector<128x256xbf16>
    %cst_14 = arith.constant dense<0.000000e+00> : vector<16x256xf32>
    %27 = tpu.matmul %23, %26, %cst_14 {dimension_numbers = #tpu.dot_dimension_numbers<[1], [0], [0], [1], [0, 0, 1, 1], [], []>} : vector<16x128xbf16>, vector<128x256xbf16>, vector<16x256xf32> -> vector<16x256xf32>
    %28 = arith.negf %27 : vector<16x256xf32>
    %29 = math.exp %28 : vector<16x256xf32>
    %cst_15 = arith.constant 1.000000e+00 : f32
    %30 = vector.broadcast %cst_15 : f32 to vector<16x256xf32>
    %31 = arith.addf %30, %29 : vector<16x256xf32>
    %32 = arith.divf %30, %31 : vector<16x256xf32>
    %33 = arith.mulf %27, %32 : vector<16x256xf32>
    %34 = arith.mulf %33, %25 : vector<16x256xf32>
    %35 = arith.truncf %34 : vector<16x256xf32> to vector<16x256xbf16>
    %c0_16 = arith.constant 0 : index
    %c0_17 = arith.constant 0 : index
    %36 = vector.load %arg6[%c0_16, %c0_17] : memref<256x128xbf16, #tpu.memory_space<vmem>>, vector<256x128xbf16>
    %cst_18 = arith.constant dense<0.000000e+00> : vector<16x128xf32>
    %37 = tpu.matmul %35, %36, %cst_18 {dimension_numbers = #tpu.dot_dimension_numbers<[1], [0], [0], [1], [0, 0, 1, 1], [], []>} : vector<16x256xbf16>, vector<256x128xbf16>, vector<16x128xf32> -> vector<16x128xf32>
    %c0_19 = arith.constant 0 : index
    %c0_20 = arith.constant 0 : index
    %38 = vector.load %arg7[%c0_19, %c0_20] : memref<16x128xf32, #tpu.memory_space<vmem>>, vector<16x128xf32>
    tpu.vector_store %arg7[%c0_19, %c0_20], %37 {strides = array<i32>} : memref<16x128xf32, #tpu.memory_space<vmem>>, vector<16x128xf32>,
    return
  }
  func.func @transform_0(%arg0: i32) -> (i32, i32) {
    %c0_i32 = arith.constant 0 : i32
    %c0_i32_0 = arith.constant 0 : i32
    return %arg0, %c0_i32 : i32, i32
  }
  func.func @transform_1(%arg0: i32) -> (i32, i32) {
    %c0_i32 = arith.constant 0 : i32
    %c0_i32_0 = arith.constant 0 : i32
    %c0_i32_1 = arith.constant 0 : i32
    return %c0_i32, %c0_i32_0 : i32, i32
  }
  func.func @transform_2(%arg0: i32) -> (i32, i32) {
    %c0_i32 = arith.constant 0 : i32
    %c0_i32_0 = arith.constant 0 : i32
    %c0_i32_1 = arith.constant 0 : i32
    return %c0_i32, %c0_i32_0 : i32, i32
  }
  func.func @transform_3(%arg0: i32) -> (i32, i32) {
    %c0_i32 = arith.constant 0 : i32
    %c0_i32_0 = arith.constant 0 : i32
    %c0_i32_1 = arith.constant 0 : i32
    return %c0_i32, %c0_i32_0 : i32, i32
  }
  func.func @transform_4(%arg0: i32) -> (i32, i32) {
    %c0_i32 = arith.constant 0 : i32
    %c0_i32_0 = arith.constant 0 : i32
    %c0_i32_1 = arith.constant 0 : i32
    return %c0_i32, %c0_i32_0 : i32, i32
  }
  func.func @transform_5(%arg0: i32) -> (i32, i32) {
    %c0_i32 = arith.constant 0 : i32
    %c0_i32_0 = arith.constant 0 : i32
    %c0_i32_1 = arith.constant 0 : i32
    return %c0_i32, %c0_i32_0 : i32, i32
  }
  func.func @transform_6(%arg0: i32) -> (i32, i32) {
    %c0_i32 = arith.constant 0 : i32
    %c0_i32_0 = arith.constant 0 : i32
    return %arg0, %c0_i32 : i32, i32
  }
}

module attributes {stable_mosaic.version = 11 : i64} {
  func.func @_pre_ln_transition_kernel(%arg0: i32, %arg1: memref<16x128xf32, #tpu.memory_space<vmem>>, %arg2: memref<1x128xf32, #tpu.memory_space<vmem>>, %arg3: memref<1x128xf32, #tpu.memory_space<vmem>>, %arg4: memref<128x256xbf16, #tpu.memory_space<vmem>>, %arg5: memref<128x256xbf16, #tpu.memory_space<vmem>>, %arg6: memref<256x128xbf16, #tpu.memory_space<vmem>>, %arg7: memref<16x128xf32, #tpu.memory_space<vmem>>) attributes {dimension_semantics = [#tpu.dimension_semantics<parallel>], iteration_bounds = array<i64: 1>, scalar_prefetch = 0 : i64, scratch_operands = 0 : i64, tpu.core_type = #tpu.core_type<tc>, window_params = [{transform_indices = @transform_0, window_bounds = array<i64: 16, 128>}, {pipeline_mode = #tpu.pipeline_mode<synchronous>, transform_indices = @transform_1, window_bounds = array<i64: 1, 128>}, {pipeline_mode = #tpu.pipeline_mode<synchronous>, transform_indices = @transform_2, window_bounds = array<i64: 1, 128>}, {pipeline_mode = #tpu.pipeline_mode<synchronous>, transform_indices = @transform_3, window_bounds = array<i64: 128, 256>}, {pipeline_mode = #tpu.pipeline_mode<synchronous>, transform_indices = @transform_4, window_bounds = array<i64: 128, 256>}, {pipeline_mode = #tpu.pipeline_mode<synchronous>, transform_indices = @transform_5, window_bounds = array<i64: 256, 128>}, {transform_indices = @transform_6, window_bounds = array<i64: 16, 128>}]} {
    %c0 = arith.constant 0 : index
    %c0_0 = arith.constant 0 : index
    %0 = vector.load %arg1[%c0, %c0_0] : memref<16x128xf32, #tpu.memory_space<vmem>>, vector<16x128xf32>
    %cst = arith.constant dense<0.000000e+00> : vector<16xf32>
    %1 = vector.multi_reduction <add>, %0, %cst [1] : vector<16x128xf32> to vector<16xf32>
    %2 = vector.shape_cast %1 : vector<16xf32> to vector<16x1xf32>
    %cst_1 = arith.constant 1.280000e+02 : f32
    %3 = vector.broadcast %cst_1 : f32 to vector<16x1xf32>
    %4 = arith.divf %2, %3 : vector<16x1xf32>
    %5 = vector.broadcast %4 : vector<16x1xf32> to vector<16x128xf32>
    %6 = arith.subf %0, %5 : vector<16x128xf32>
    %7 = arith.mulf %6, %6 : vector<16x128xf32>
    %cst_2 = arith.constant dense<0.000000e+00> : vector<16xf32>
    %8 = vector.multi_reduction <add>, %7, %cst_2 [1] : vector<16x128xf32> to vector<16xf32>
    %9 = vector.shape_cast %8 : vector<16xf32> to vector<16x1xf32>
    %cst_3 = arith.constant 1.280000e+02 : f32
    %10 = vector.broadcast %cst_3 : f32 to vector<16x1xf32>
    %11 = arith.divf %9, %10 : vector<16x1xf32>
    %cst_4 = arith.constant 9.99999974E-6 : f32
    %12 = vector.broadcast %cst_4 : f32 to vector<16x1xf32>
    %13 = arith.addf %11, %12 : vector<16x1xf32>
    %14 = math.rsqrt %13 : vector<16x1xf32>
    %15 = vector.broadcast %14 : vector<16x1xf32> to vector<16x128xf32>
    %16 = arith.mulf %6, %15 : vector<16x128xf32>
    %c0_5 = arith.constant 0 : index
    %c0_6 = arith.constant 0 : index
    %17 = vector.load %arg2[%c0_5, %c0_6] : memref<1x128xf32, #tpu.memory_space<vmem>>, vector<1x128xf32>
    %18 = vector.broadcast %17 : vector<1x128xf32> to vector<16x128xf32>
    %19 = arith.mulf %16, %18 : vector<16x128xf32>
    %c0_7 = arith.constant 0 : index
    %c0_8 = arith.constant 0 : index
    %20 = vector.load %arg3[%c0_7, %c0_8] : memref<1x128xf32, #tpu.memory_space<vmem>>, vector<1x128xf32>
    %21 = vector.broadcast %20 : vector<1x128xf32> to vector<16x128xf32>
    %22 = arith.addf %19, %21 : vector<16x128xf32>
    %23 = arith.truncf %22 : vector<16x128xf32> to vector<16x128xbf16>
    %c0_9 = arith.constant 0 : index
    %c0_10 = arith.constant 0 : index
    %24 = vector.load %arg4[%c0_9, %c0_10] : memref<128x256xbf16, #tpu.memory_space<vmem>>, vector<128x256xbf16>
    %cst_11 = arith.constant dense<0.000000e+00> : vector<16x256xf32>
    %25 = tpu.matmul %23, %24, %cst_11 {dimension_numbers = #tpu.dot_dimension_numbers<[1], [0], [0], [1], [0, 0, 1, 1], [], []>} : vector<16x128xbf16>, vector<128x256xbf16>, vector<16x256xf32> -> vector<16x256xf32>
    %c0_12 = arith.constant 0 : index
    %c0_13 = arith.constant 0 : index
    %26 = vector.load %arg5[%c0_12, %c0_13] : memref<128x256xbf16, #tpu.memory_space<vmem>>, vector<128x256xbf16>
    %cst_14 = arith.constant dense<0.000000e+00> : vector<16x256xf32>
    %27 = tpu.matmul %23, %26, %cst_14 {dimension_numbers = #tpu.dot_dimension_numbers<[1], [0], [0], [1], [0, 0, 1, 1], [], []>} : vector<16x128xbf16>, vector<128x256xbf16>, vector<16x256xf32> -> vector<16x256xf32>
    %28 = arith.negf %27 : vector<16x256xf32>
    %29 = math.exp %28 : vector<16x256xf32>
    %cst_15 = arith.constant 1.000000e+00 : f32
    %30 = vector.broadcast %cst_15 : f32 to vector<16x256xf32>
    %31 = arith.addf %30, %29 : vector<16x256xf32>
    %32 = arith.divf %30, %31 : vector<16x256xf32>
    %33 = arith.mulf %27, %32 : vector<16x256xf32>
    %34 = arith.mulf %33, %25 : vector<16x256xf32>
    %35 = arith.truncf %34 : vector<16x256xf32> to vector<16x256xbf16>
    %c0_16 = arith.constant 0 : index
    %c0_17 = arith.constant 0 : index
    %36 = vector.load %arg6[%c0_16, %c0_17] : memref<256x128xbf16, #tpu.memory_space<vmem>>, vector<256x128xbf16>
    %cst_18 = arith.constant dense<0.000000e+00> : vector<16x128xf32>
    %37 = tpu.matmul %35, %36, %cst_18 {dimension_numbers = #tpu.dot_dimension_numbers<[1], [0], [0], [1], [0, 0, 1, 1], [], []>} : vector<16x256xbf16>, vector<256x128xbf16>, vector<16x128xf32> -> vector<16x128xf32>
    %c0_19 = arith.constant 0 : index
    %c0_20 = arith.constant 0 : index
    %38 = vector.load %arg7[%c0_19, %c0_20] : memref<16x128xf32, #tpu.memory_space<vmem>>, vector<16x128xf32>
    tpu.vector_store %arg7[%c0_19, %c0_20], %37 {strides = array<i32>} : memref<16x128xf32, #tpu.memory_space<vmem>>, vector<16x128xf32>,
    return
  }
  func.func @transform_0(%arg0: i32) -> (i32, i32) {
    %c0_i32 = arith.constant 0 : i32
    %c0_i32_0 = arith.constant 0 : i32
    return %arg0, %c0_i32 : i32, i32
  }
  func.func @transform_1(%arg0: i32) -> (i32, i32) {
    %c0_i32 = arith.constant 0 : i32
    %c0_i32_0 = arith.constant 0 : i32
    %c0_i32_1 = arith.constant 0 : i32
    return %c0_i32, %c0_i32_0 : i32, i32
  }
  func.func @transform_2(%arg0: i32) -> (i32, i32) {
    %c0_i32 = arith.constant 0 : i32
    %c0_i32_0 = arith.constant 0 : i32
    %c0_i32_1 = arith.constant 0 : i32
    return %c0_i32, %c0_i32_0 : i32, i32
  }
  func.func @transform_3(%arg0: i32) -> (i32, i32) {
    %c0_i32 = arith.constant 0 : i32
    %c0_i32_0 = arith.constant 0 : i32
    %c0_i32_1 = arith.constant 0 : i32
    return %c0_i32, %c0_i32_0 : i32, i32
  }
  func.func @transform_4(%arg0: i32) -> (i32, i32) {
    %c0_i32 = arith.constant 0 : i32
    %c0_i32_0 = arith.constant 0 : i32
    %c0_i32_1 = arith.constant 0 : i32
    return %c0_i32, %c0_i32_0 : i32, i32
  }
  func.func @transform_5(%arg0: i32) -> (i32, i32) {
    %c0_i32 = arith.constant 0 : i32
    %c0_i32_0 = arith.constant 0 : i32
    %c0_i32_1 = arith.constant 0 : i32
    return %c0_i32, %c0_i32_0 : i32, i32
  }
  func.func @transform_6(%arg0: i32) -> (i32, i32) {
    %c0_i32 = arith.constant 0 : i32
    %c0_i32_0 = arith.constant 0 : i32
    return %arg0, %c0_i32 : i32, i32
  }
}

</mosaic_0001>

<bundles_post_ra>
// kernel: tpu_custom_call.1
= control target key start
LH: loop header
LB: loop body
LE: loop exit
PB: predicated region body
PF: predicated region fallthrough
CT: control target
= control target key end

     0   :  { %11 = vsyncpa [#allocation3], 0  ;;  %s992_s0 = inlined_call_operand.hbm [shape: f32[16,128], index: 0, kind: input, shape index: {}]   ;;  %s993_s1 = inlined_call_operand.vmem [shape: f32[1,128], index: 1, kind: input, shape index: {}]   ;;  %s994_s2 = inlined_call_operand.vmem [shape: f32[1,128], index: 2, kind: input, shape index: {}]   ;;  %s995_s3 = inlined_call_operand.hbm [shape: bf16[128,256], index: 3, kind: input, shape index: {}]   ;;  %s996_s4 = inlined_call_operand.hbm [shape: bf16[128,256], index: 4, kind: input, shape index: {}]   ;;  %s997_s5 = inlined_call_operand.hbm [shape: bf16[256,128], index: 5, kind: input, shape index: {}]   ;;  %s998_s6 = inlined_call_operand.hbm [shape: f32[16,128], index: 6, kind: output, shape index: {}]  }
   0x1   :  { %12 = vsyncpa [#allocation6], 0 }
   0x2   :  { %13 = vsyncpa [#allocation9], 0 }
   0x3   :  { %14 = vsyncpa [#allocation4], 0  ;;  %s904_s21 = smov [#allocation5]   ;;  %s905_s23 = smov [#allocation2]  }
   0x4   :  { %s36_s22 = sshll.u32 %s904_s21, 4  ;;  %s20_s24 = sshll.u32 %s905_s23, 4  ;;  %s37_s22 = int_to_ptr.vmem [resolvable:$true] %s36_s22  ;;  %s21_s24 = int_to_ptr.vmem [resolvable:$true] %s20_s24 }
   0x5   :  { %s804_s25 = scalar_lea.vmem %s37_s22, 2048  ;;  %p809_p1 = scmp.lt.s32.totalorder %s37_s22, %s37_s22 }
   0x6   :  { %p805_p0 = scmp.ne.s32.totalorder %s37_s22, %s804_s25  ;;  %p810_p2 = scmp.lt.s32.totalorder %s804_s25, %s804_s25 }
   0x8   :  { %p811_p3 = por %p810_p2, %p809_p1 }
   0xa   :  { %p812_p4 = pnand %p811_p3, %p805_p0 }
   0xc   :  { %815 = shalt.err (!%p812_p4)
}
   0xd   :  { %s906_s26 = smov 128   ;;  %s907_s27 = smov 8  }
   0xe   :  { %42 = dma.hbm_to_vmem [thread:$0]  %s995_s3, 2048, %s37_s22, [#allocation6], %s906_s26, %s906_s26, %s907_s27  }
   0xf   :  { %s824_s30 = scalar_lea.vmem %s21_s24, 256  ;;  %p829_p6 = scmp.lt.s32.totalorder %s21_s24, %s21_s24 }
  0x10   :  { %p825_p5 = scmp.ne.s32.totalorder %s21_s24, %s824_s30  ;;  %p830_p7 = scmp.lt.s32.totalorder %s824_s30, %s824_s30 }
  0x12   :  { %p831_p8 = por %p830_p7, %p829_p6 }
  0x14   :  { %p832_p9 = pnand %p831_p8, %p825_p5 }
  0x16   :  { %835 = shalt.err (!%p832_p9)
}
  0x17   :  { %26 = dma.hbm_to_vmem [thread:$0]  %s992_s0, 256, %s21_s24, [#allocation3], %s906_s26, %s906_s26, %s907_s27  }
  0x18   :  { %s908_s9 = smov [#allocation7]   ;;  %s909_s11 = smov [#allocation8]  }
  0x19   :  { %s48_s10 = sshll.u32 %s908_s9, 4  ;;  %s60_s12 = sshll.u32 %s909_s11, 4  ;;  %s49_s10 = int_to_ptr.vmem [resolvable:$true] %s48_s10  ;;  %s61_s12 = int_to_ptr.vmem [resolvable:$true] %s60_s12 }
  0x1a   :  { %s844_s3 = scalar_lea.vmem %s49_s10, 2048  ;;  %p849_p11 = scmp.lt.s32.totalorder %s49_s10, %s49_s10 }
  0x1b   :  { %p845_p10 = scmp.ne.s32.totalorder %s49_s10, %s844_s3  ;;  %p850_p12 = scmp.lt.s32.totalorder %s844_s3, %s844_s3 }
  0x1d   :  { %p851_p13 = por %p850_p12, %p849_p11 }
  0x1f   :  { %p852_p0 = pnand %p851_p13, %p845_p10 }
  0x21   :  { %855 = shalt.err (!%p852_p0)
}
  0x22   :  { %54 = dma.hbm_to_vmem [thread:$0]  %s996_s4, 2048, %s49_s10, [#allocation6], %s906_s26, %s906_s26, %s907_s27  }
  0x23   :  { %s864_s0 = scalar_lea.vmem %s61_s12, 2048  ;;  %p869_p2 = scmp.lt.s32.totalorder %s61_s12, %s61_s12 }
  0x24   :  { %p865_p1 = scmp.ne.s32.totalorder %s61_s12, %s864_s0  ;;  %p870_p3 = scmp.lt.s32.totalorder %s864_s0, %s864_s0 }
  0x26   :  { %p871_p4 = por %p870_p3, %p869_p2 }
  0x28   :  { %p872_p5 = pnand %p871_p4, %p865_p1 }
  0x2a   :  { %875 = shalt.err (!%p872_p5)
}
  0x2b   :  { %s910_s15 = smov 64   ;;  %s911_s16 = smov 4  }
  0x2c   :  { %66 = dma.hbm_to_vmem [thread:$0]  %s997_s5, 2048, %s61_s12, [#allocation9], %s910_s15, %s910_s15, %s911_s16  }
  0x2d   :  { %896 = dma.done.wait [#allocation3], 256  }
  0x2e   :  { %897 = vsyncadd [#allocation3], 4294967040 }
  0x2f   :  { %898 = dma.done.wait [#allocation6], 4096  }
  0x30   :  { %899 = vsyncadd [#allocation6], 4294963200 }
  0x31   :  { %900 = dma.done.wait [#allocation9], 2048  }
  0x32   :  { %901 = vsyncadd [#allocation9], 4294965248  ;;  %v80_v0 = vld [vmem:[#allocation2] sm:$0xff]  ;;  %v81_v1 = vld [vmem:[#allocation2 + $0x8] sm:$0xff]  ;;  %v912_v36 = vmov 0  }
  0x33   :  { %82 = vadd.xlane.f32.xlu0 %v80_v0  ;;  %v712_v2 = vld [vmem:[#allocation5 + $0x74] ss:$8 sps:$4 sm:$0xff]   ;;  %v716_v4 = vld [vmem:[#allocation5 + $0x70] ss:$8 sps:$4 sm:$0xff]   ;;  %v718_v14 = vld [vmem:[#allocation5 + $0x64] ss:$8 sps:$4 sm:$0xff]   ;;  %252 = vmatprep.mubr.bf16.mxu0 %v912_v36 }
  0x34   :  { %v714_v3 = vld [vmem:[#allocation7 + $0x74] ss:$8 sps:$4 sm:$0xff]   ;;  %v717_v5 = vld [vmem:[#allocation7 + $0x70] ss:$8 sps:$4 sm:$0xff]   ;;  %220 = vmatprep.subr.bf16.mxu0 %v712_v2  ;;  %v720_v15 = vld [vmem:[#allocation7 + $0x64] ss:$8 sps:$4 sm:$0xff]   ;;  %391 = vmatprep.mubr.bf16.mxu1 %v912_v36 }
  0x35   :  { %359 = vmatprep.subr.bf16.mxu1 %v714_v3  ;;  %221 = vmatpush1.bf16.msra.mxu0 %v716_v4  ;;  %v722_v16 = vld [vmem:[#allocation5 + $0x60] ss:$8 sps:$4 sm:$0xff]   ;;  %v724_v18 = vld [vmem:[#allocation5 + $0x54] ss:$8 sps:$4 sm:$0xff]   ;;  %v728_v20 = vld [vmem:[#allocation5 + $0x50] ss:$8 sps:$4 sm:$0xff]  }
  0x36   :  { %360 = vmatpush1.bf16.msra.mxu1 %v717_v5  ;;  %v723_v17 = vld [vmem:[#allocation7 + $0x60] ss:$8 sps:$4 sm:$0xff]   ;;  %222 = vmatprep.subr.bf16.mxu0 %v718_v14  ;;  %v726_v19 = vld [vmem:[#allocation7 + $0x54] ss:$8 sps:$4 sm:$0xff]   ;;  %v729_v21 = vld [vmem:[#allocation7 + $0x50] ss:$8 sps:$4 sm:$0xff]  }
  0x37   :  { %84 = vadd.xlane.f32.xlu0 %v81_v1  ;;  %361 = vmatprep.subr.bf16.mxu1 %v720_v15  ;;  %v730_v22 = vld [vmem:[#allocation5 + $0x44] ss:$8 sps:$4 sm:$0xff]   ;;  %v734_v24 = vld [vmem:[#allocation5 + $0x40] ss:$8 sps:$4 sm:$0xff]   ;;  %v736_v26 = vld [vmem:[#allocation5 + $0x34] ss:$8 sps:$4 sm:$0xff]  }
  0x38   :  { %v732_v23 = vld [vmem:[#allocation7 + $0x44] ss:$8 sps:$4 sm:$0xff]   ;;  %v735_v25 = vld [vmem:[#allocation7 + $0x40] ss:$8 sps:$4 sm:$0xff]   ;;  %v738_v27 = vld [vmem:[#allocation7 + $0x34] ss:$8 sps:$4 sm:$0xff]  }
  0x39   :  { %223 = vmatpush1.bf16.msra.mxu0 %v722_v16  ;;  %v740_v28 = vld [vmem:[#allocation5 + $0x30] ss:$8 sps:$4 sm:$0xff]   ;;  %v742_v30 = vld [vmem:[#allocation5 + $0x24] ss:$8 sps:$4 sm:$0xff]   ;;  %v746_v32 = vld [vmem:[#allocation5 + $0x20] ss:$8 sps:$4 sm:$0xff]  }
  0x3a   :  { %362 = vmatpush1.bf16.msra.mxu1 %v723_v17  ;;  %224 = vmatprep.subr.bf16.mxu0 %v724_v18  ;;  %v741_v29 = vld [vmem:[#allocation7 + $0x30] ss:$8 sps:$4 sm:$0xff]   ;;  %v744_v31 = vld [vmem:[#allocation7 + $0x24] ss:$8 sps:$4 sm:$0xff]   ;;  %v747_v33 = vld [vmem:[#allocation7 + $0x20] ss:$8 sps:$4 sm:$0xff]  }
  0x3b   :  { %363 = vmatprep.subr.bf16.mxu1 %v726_v19  ;;  %v748_v34 = vld [vmem:[#allocation5 + $0x14] ss:$8 sps:$4 sm:$0xff]   ;;  %v752_v37 = vld [vmem:[#allocation5 + $0x10] ss:$8 sps:$4 sm:$0xff]   ;;  %v754_v39 = vld [vmem:[#allocation5 + $0x4] ss:$8 sps:$4 sm:$0xff]  }
  0x3c   :  { %v750_v35 = vld [vmem:[#allocation7 + $0x14] ss:$8 sps:$4 sm:$0xff]   ;;  %v753_v38 = vld [vmem:[#allocation7 + $0x10] ss:$8 sps:$4 sm:$0xff]   ;;  %v756_v40 = vld [vmem:[#allocation7 + $0x4] ss:$8 sps:$4 sm:$0xff]  }
  0x3d   :  { %225 = vmatpush1.bf16.msra.mxu0 %v728_v20  ;;  %v758_v41 = vld [vmem:[#allocation5] ss:$8 sps:$4 sm:$0xff]   ;;  %v626_v51 = vld [vmem:[%s993_s1] ss:$0 sm:$0xff]  ;;  %v760_v60 = vld [vmem:[#allocation8 + $0x78] sm:$0xff]   ;;  %s913_s1 = smov [#allocation10]  }
  0x3e   :  { %364 = vmatpush1.bf16.msra.mxu1 %v729_v21  ;;  %226 = vmatprep.subr.bf16.mxu0 %v730_v22  ;;  %v759_v42 = vld [vmem:[#allocation7] ss:$8 sps:$4 sm:$0xff]   ;;  %v627_v55 = vld [vmem:[%s994_s2] ss:$0 sm:$0xff]  ;;  %v761_v61 = vld [vmem:[#allocation8 + $0x38] sm:$0xff]   ;;  %s612_s2 = sshll.u32 %s913_s1, 4  ;;  %s613_s2 = int_to_ptr.vmem [resolvable:$true] %s612_s2 }
  0x3f   :  { %365 = vmatprep.subr.bf16.mxu1 %v732_v23  ;;  %v762_v62 = vld [vmem:[#allocation8 + $0x70] sm:$0xff]   ;;  %v766_v2 = vld [vmem:[#allocation8 + $0x60] sm:$0xff]   ;;  %v768_v4 = vld [vmem:[#allocation8 + $0x58] sm:$0xff]   ;;  %s876_s21 = scalar_lea.vmem %s613_s2, 256  ;;  %p881_p7 = scmp.lt.s32.totalorder %s613_s2, %s613_s2 }
  0x40   :  { %v763_v63 = vld [vmem:[#allocation8 + $0x30] sm:$0xff]   ;;  %v767_v3 = vld [vmem:[#allocation8 + $0x20] sm:$0xff]   ;;  %v769_v5 = vld [vmem:[#allocation8 + $0x18] sm:$0xff]   ;;  %p877_p6 = scmp.ne.s32.totalorder %s613_s2, %s876_s21  ;;  %p882_p8 = scmp.lt.s32.totalorder %s876_s21, %s876_s21 }
  0x41   :  { %227 = vmatpush1.bf16.msra.mxu0 %v734_v24 }
  0x42   :  { %366 = vmatpush1.bf16.msra.mxu1 %v735_v25  ;;  %228 = vmatprep.subr.bf16.mxu0 %v736_v26  ;;  %p883_p9 = por %p882_p8, %p881_p7 }
  0x43   :  { %367 = vmatprep.subr.bf16.mxu1 %v738_v27 }
  0x44   :  { %p884_p10 = pnand %p883_p9, %p877_p6 }
  0x45   :  { %229 = vmatpush1.bf16.msra.mxu0 %v740_v28 }
  0x46   :  { %368 = vmatpush1.bf16.msra.mxu1 %v741_v29  ;;  %230 = vmatprep.subr.bf16.mxu0 %v742_v30 }
  0x47   :  { %369 = vmatprep.subr.bf16.mxu1 %v744_v31 }
  0x49   :  { %231 = vmatpush1.bf16.msra.mxu0 %v746_v32 }
  0x4a   :  { %370 = vmatpush1.bf16.msra.mxu1 %v747_v33  ;;  %232 = vmatprep.subr.bf16.mxu0 %v748_v34 }
  0x4b   :  { %371 = vmatprep.subr.bf16.mxu1 %v750_v35 }
  0x4d   :  { %233 = vmatpush1.bf16.msra.mxu0 %v752_v37 }
  0x4e   :  { %372 = vmatpush1.bf16.msra.mxu1 %v753_v38  ;;  %234 = vmatprep.subr.bf16.mxu0 %v754_v39 }
  0x4f   :  { %373 = vmatprep.subr.bf16.mxu1 %v756_v40 }
  0x51   :  { %235 = vmatpush1.bf16.msra.mxu0 %v758_v41 }
  0x52   :  { %374 = vmatpush1.bf16.msra.mxu1 %v759_v42  ;;  %680 = vmatprep.subr.bf16.mxu0 %v760_v60 }
  0xbc   :  { %v83_v6 = vpop.xlane.xlu0 %82 }
  0xbd   :  { %v87_v7 = vmul.f32 0.0078125, %v83_v6  ;;  %v770_v6 = vld [vmem:[#allocation8 + $0x50] sm:$0xff]  }
  0xbf   :  { %v970_v8 = vsub.f32 %v80_v0, %v87_v7  ;;  %v764_v0 = vld [vmem:[#allocation8 + $0x68] sm:$0xff]   ;;  %v771_v7 = vld [vmem:[#allocation8 + $0x10] sm:$0xff]  }
  0xc0   :  { %v85_v9 = vpop.xlane.xlu0 %84 }
  0xc1   :  { %v88_v10 = vmul.f32 0.0078125, %v85_v9  ;;  %v91_v11 = vmul.f32 %v970_v8, %v970_v8  ;;  %v773_v9 = vld [vmem:[#allocation8 + $0x8] sm:$0xff]  }
  0xc3   :  { %v974_v12 = vsub.f32 %v81_v1, %v88_v10  ;;  %93 = vadd.xlane.f32.xlu1 %v91_v11  ;;  %v765_v1 = vld [vmem:[#allocation8 + $0x28] sm:$0xff]   ;;  %v774_v10 = vld [vmem:[#allocation8 + $0x40] sm:$0xff]  }
  0xc4   :  { %v775_v11 = vld [vmem:[#allocation8] sm:$0xff]  }
  0xc5   :  { %v92_v13 = vmul.f32 %v974_v12, %v974_v12 }
  0xc7   :  { %95 = vadd.xlane.f32.xlu1 %v92_v13 }
 0x14c   :  { %v94_v43 = vpop.xlane.xlu1 %93 }
 0x14d   :  { %v97_v44 = vmul.f32 0.0078125, %v94_v43 }
 0x14f   :  { %v99_v45 = vadd.f32 1e-05, %v97_v44 }
 0x150   :  { %v96_v46 = vpop.xlane.xlu1 %95 }
 0x151   :  { %776 = vrsqrt.f32 %v99_v45  ;;  %v98_v47 = vmul.f32 0.0078125, %v96_v46 }
 0x153   :  { %v100_v48 = vadd.f32 1e-05, %v98_v47 }
 0x155   :  { %778 = vrsqrt.f32 %v100_v48 }
 0x15e   :  { %v777_v49 = vpop.eup %776 }
 0x15f   :  { %v103_v50 = vmul.f32 %v777_v49, %v970_v8  ;;  %v772_v8 = vld [vmem:[#allocation8 + $0x48] sm:$0xff]  }
 0x161   :  { %v112_v54 = vmul.f32 %v626_v51, %v103_v50 }
 0x162   :  { %v779_v52 = vpop.eup %778 }
 0x163   :  { %v104_v53 = vmul.f32 %v779_v52, %v974_v12  ;;  %v121_v57 = vadd.f32 %v627_v55, %v112_v54 }
 0x165   :  { %v113_v56 = vmul.f32 %v626_v51, %v104_v53 }
 0x167   :  { %v122_v58 = vadd.f32 %v627_v55, %v113_v56 }
 0x169   :  { %v123_v59 = vpack.c.bf16 %v122_v58, %v121_v57 }
 0x16b   :  { %253 = vmatmul.mubr.bf16.vlgmr.msra.gmra.mxu0 %v123_v59  ;;  %392 = vmatmul.mubr.bf16.vlgmr.msra.gmra.mxu1 %v123_v59 }
 0x16c   :  { %681 = vmatpush3.bf16.msra.mxu0 %v761_v61 }
 0x16d   :  { %682 = vmatprep.subr.bf16.mxu0 %v762_v62 }
 0x170   :  { %683 = vmatpush3.bf16.msra.mxu0 %v763_v63 }
 0x171   :  { %684 = vmatprep.subr.bf16.mxu0 %v764_v0 }
 0x174   :  { %685 = vmatpush3.bf16.msra.mxu0 %v765_v1 }
 0x175   :  { %686 = vmatprep.subr.bf16.mxu0 %v766_v2 }
 0x178   :  { %687 = vmatpush3.bf16.msra.mxu0 %v767_v3 }
 0x179   :  { %688 = vmatprep.subr.bf16.mxu0 %v768_v4 }
 0x17c   :  { %689 = vmatpush3.bf16.msra.mxu0 %v769_v5 }
 0x17d   :  { %690 = vmatprep.subr.bf16.mxu0 %v770_v6 }
 0x180   :  { %691 = vmatpush3.bf16.msra.mxu0 %v771_v7 }
 0x181   :  { %692 = vmatprep.subr.bf16.mxu0 %v772_v8 }
 0x184   :  { %693 = vmatpush3.bf16.msra.mxu0 %v773_v9 }
 0x185   :  { %694 = vmatprep.subr.bf16.mxu0 %v774_v10 }
 0x188   :  { %695 = vmatpush3.bf16.msra.mxu0 %v775_v11 }
 0x22b   :  { %v393_v12 = vpop.f32.mrf.mxu1  ;;  %v254_v28 = vpop.f32.mrf.mxu0 }
 0x22c   :  { %v660_v13 = vmul.f32 -1.442695, %v393_v12 }
 0x22d   :  { %v395_v14 = vpop.f32.mrf.mxu1  ;;  %v256_v29 = vpop.f32.mrf.mxu0 }
 0x22e   :  { %780 = vpow2.f32 %v660_v13  ;;  %v661_v15 = vmul.f32 -1.442695, %v395_v14 }
 0x22f   :  { %v397_v16 = vpop.f32.mrf.mxu1  ;;  %v258_v33 = vpop.f32.mrf.mxu0 }
 0x230   :  { %782 = vpow2.f32 %v661_v15  ;;  %v662_v17 = vmul.f32 -1.442695, %v397_v16 }
 0x231   :  { %v399_v18 = vpop.f32.mrf.mxu1  ;;  %v260_v40 = vpop.f32.mrf.mxu0 }
 0x232   :  { %784 = vpow2.f32 %v662_v17  ;;  %v663_v19 = vmul.f32 -1.442695, %v399_v18 }
 0x234   :  { %786 = vpow2.f32 %v663_v19 }
 0x23b   :  { %v781_v20 = vpop.eup %780 }
 0x23c   :  { %v414_v22 = vadd.f32 1.0, %v781_v20 }
 0x23d   :  { %v783_v21 = vpop.eup %782 }
 0x23e   :  { %v415_v23 = vadd.f32 1.0, %v783_v21 }
 0x23f   :  { %v785_v24 = vpop.eup %784 }
 0x240   :  { %788 = vrcp.f32 %v415_v23  ;;  %v416_v25 = vadd.f32 1.0, %v785_v24 }
 0x241   :  { %v787_v26 = vpop.eup %786  ;;  %790 = vrcp.f32 %v414_v22 }
 0x242   :  { %792 = vrcp.f32 %v416_v25  ;;  %v417_v27 = vadd.f32 1.0, %v787_v26 }
 0x244   :  { %794 = vrcp.f32 %v417_v27 }
 0x24d   :  { %v789_v30 = vpop.eup %788 }
 0x24e   :  { %v791_v31 = vpop.eup %790  ;;  %v427_v34 = vmul.f32 %v789_v30, %v395_v14 }
 0x24f   :  { %v793_v32 = vpop.eup %792  ;;  %v426_v37 = vmul.f32 %v791_v31, %v393_v12 }
 0x250   :  { %v428_v35 = vmul.f32 %v793_v32, %v397_v16  ;;  %v431_v41 = vmul.f32 %v427_v34, %v256_v29 }
 0x251   :  { %v795_v36 = vpop.eup %794  ;;  %v430_v43 = vmul.f32 %v426_v37, %v254_v28 }
 0x252   :  { %v429_v38 = vmul.f32 %v795_v36, %v399_v18  ;;  %v432_v39 = vmul.f32 %v428_v35, %v258_v33 }
 0x254   :  { %v433_v42 = vmul.f32 %v429_v38, %v260_v40  ;;  %v434_v45 = vpack.c.bf16 %v432_v39, %v430_v43 }
 0x256   :  { %v435_v44 = vpack.c.bf16 %v433_v42, %v431_v41 }
 0x258   :  { %596 = vmatprep.mubr.bf16.mxu0 %v435_v44 }
 0x259   :  { %597 = vmatmul.mubr.bf16.vlgmr.msra.gmra.mxu0 %v434_v45 }
 0x319   :  { %v696_v46 = vpop.f32.mrf.mxu0 }
 0x31b   :  { %v697_v47 = vpop.f32.mrf.mxu0 }
 0x31c   :  { %v698_v48 = vadd.f32 %v697_v47, %v696_v46 }
 0x31d   :  { %v699_v49 = vpop.f32.mrf.mxu0 }
 0x31e   :  { %605 = vst [vmem:[#allocation10] sm:$0xff] %v698_v48 }
 0x31f   :  { %v700_v50 = vpop.f32.mrf.mxu0 }
 0x320   :  { %v701_v51 = vadd.f32 %v700_v50, %v699_v49 }
 0x322   :  { %606 = vst [vmem:[#allocation10 + $0x8] sm:$0xff] %v701_v51 }
 0x323   :  { %887 = shalt.err (!%p884_p10)
}
 0x324   :  { %618 = dma.vmem_to_hbm [thread:$0]  %s613_s2, 256, %s998_s6, [#allocation4], %s906_s26, %s906_s26, %s907_s27  }
 0x325   :  { %902 = dma.done.wait [#allocation4], 256  }
 0x326   :  { %903 = vsyncadd [#allocation4], 4294967040 }
 0x327   :  { %622 = vsyncpa [#allocation3], 1 }
 0x328   :  { %623 = vsyncpa [#allocation6], 1 }
 0x329   :  { %624 = vsyncpa [#allocation9], 1 }
 0x32a   :  { %625 = vsyncpa [#allocation4], 1 }

// kernel: tpu_custom_call.1
= control target key start
LH: loop header
LB: loop body
LE: loop exit
PB: predicated region body
PF: predicated region fallthrough
CT: control target
= control target key end

     0   :  { %11 = vsyncpa [#allocation3], 0  ;;  %s992_s0 = inlined_call_operand.hbm [shape: f32[16,128], index: 0, kind: input, shape index: {}]   ;;  %s993_s1 = inlined_call_operand.vmem [shape: f32[1,128], index: 1, kind: input, shape index: {}]   ;;  %s994_s2 = inlined_call_operand.vmem [shape: f32[1,128], index: 2, kind: input, shape index: {}]   ;;  %s995_s3 = inlined_call_operand.hbm [shape: bf16[128,256], index: 3, kind: input, shape index: {}]   ;;  %s996_s4 = inlined_call_operand.hbm [shape: bf16[128,256], index: 4, kind: input, shape index: {}]   ;;  %s997_s5 = inlined_call_operand.hbm [shape: bf16[256,128], index: 5, kind: input, shape index: {}]   ;;  %s998_s6 = inlined_call_operand.hbm [shape: f32[16,128], index: 6, kind: output, shape index: {}]  }
   0x1   :  { %12 = vsyncpa [#allocation6], 0 }
   0x2   :  { %13 = vsyncpa [#allocation9], 0 }
   0x3   :  { %14 = vsyncpa [#allocation4], 0  ;;  %s904_s21 = smov [#allocation5]   ;;  %s905_s23 = smov [#allocation2]  }
   0x4   :  { %s36_s22 = sshll.u32 %s904_s21, 4  ;;  %s20_s24 = sshll.u32 %s905_s23, 4  ;;  %s37_s22 = int_to_ptr.vmem [resolvable:$true] %s36_s22  ;;  %s21_s24 = int_to_ptr.vmem [resolvable:$true] %s20_s24 }
   0x5   :  { %s804_s25 = scalar_lea.vmem %s37_s22, 2048  ;;  %p809_p1 = scmp.lt.s32.totalorder %s37_s22, %s37_s22 }
   0x6   :  { %p805_p0 = scmp.ne.s32.totalorder %s37_s22, %s804_s25  ;;  %p810_p2 = scmp.lt.s32.totalorder %s804_s25, %s804_s25 }
   0x8   :  { %p811_p3 = por %p810_p2, %p809_p1 }
   0xa   :  { %p812_p4 = pnand %p811_p3, %p805_p0 }
   0xc   :  { %815 = shalt.err (!%p812_p4)
}
   0xd   :  { %s906_s26 = smov 128   ;;  %s907_s27 = smov 8  }
   0xe   :  { %42 = dma.hbm_to_vmem [thread:$0]  %s995_s3, 2048, %s37_s22, [#allocation6], %s906_s26, %s906_s26, %s907_s27  }
   0xf   :  { %s824_s30 = scalar_lea.vmem %s21_s24, 256  ;;  %p829_p6 = scmp.lt.s32.totalorder %s21_s24, %s21_s24 }
  0x10   :  { %p825_p5 = scmp.ne.s32.totalorder %s21_s24, %s824_s30  ;;  %p830_p7 = scmp.lt.s32.totalorder %s824_s30, %s824_s30 }
  0x12   :  { %p831_p8 = por %p830_p7, %p829_p6 }
  0x14   :  { %p832_p9 = pnand %p831_p8, %p825_p5 }
  0x16   :  { %835 = shalt.err (!%p832_p9)
}
  0x17   :  { %26 = dma.hbm_to_vmem [thread:$0]  %s992_s0, 256, %s21_s24, [#allocation3], %s906_s26, %s906_s26, %s907_s27  }
  0x18   :  { %s908_s9 = smov [#allocation7]   ;;  %s909_s11 = smov [#allocation8]  }
  0x19   :  { %s48_s10 = sshll.u32 %s908_s9, 4  ;;  %s60_s12 = sshll.u32 %s909_s11, 4  ;;  %s49_s10 = int_to_ptr.vmem [resolvable:$true] %s48_s10  ;;  %s61_s12 = int_to_ptr.vmem [resolvable:$true] %s60_s12 }
  0x1a   :  { %s844_s3 = scalar_lea.vmem %s49_s10, 2048  ;;  %p849_p11 = scmp.lt.s32.totalorder %s49_s10, %s49_s10 }
  0x1b   :  { %p845_p10 = scmp.ne.s32.totalorder %s49_s10, %s844_s3  ;;  %p850_p12 = scmp.lt.s32.totalorder %s844_s3, %s844_s3 }
  0x1d   :  { %p851_p13 = por %p850_p12, %p849_p11 }
  0x1f   :  { %p852_p0 = pnand %p851_p13, %p845_p10 }
  0x21   :  { %855 = shalt.err (!%p852_p0)
}
  0x22   :  { %54 = dma.hbm_to_vmem [thread:$0]  %s996_s4, 2048, %s49_s10, [#allocation6], %s906_s26, %s906_s26, %s907_s27  }
  0x23   :  { %s864_s0 = scalar_lea.vmem %s61_s12, 2048  ;;  %p869_p2 = scmp.lt.s32.totalorder %s61_s12, %s61_s12 }
  0x24   :  { %p865_p1 = scmp.ne.s32.totalorder %s61_s12, %s864_s0  ;;  %p870_p3 = scmp.lt.s32.totalorder %s864_s0, %s864_s0 }
  0x26   :  { %p871_p4 = por %p870_p3, %p869_p2 }
  0x28   :  { %p872_p5 = pnand %p871_p4, %p865_p1 }
  0x2a   :  { %875 = shalt.err (!%p872_p5)
}
  0x2b   :  { %s910_s15 = smov 64   ;;  %s911_s16 = smov 4  }
  0x2c   :  { %66 = dma.hbm_to_vmem [thread:$0]  %s997_s5, 2048, %s61_s12, [#allocation9], %s910_s15, %s910_s15, %s911_s16  }
  0x2d   :  { %896 = dma.done.wait [#allocation3], 256  }
  0x2e   :  { %897 = vsyncadd [#allocation3], 4294967040 }
  0x2f   :  { %898 = dma.done.wait [#allocation6], 4096  }
  0x30   :  { %899 = vsyncadd [#allocation6], 4294963200 }
  0x31   :  { %900 = dma.done.wait [#allocation9], 2048  }
  0x32   :  { %901 = vsyncadd [#allocation9], 4294965248  ;;  %v80_v0 = vld [vmem:[#allocation2] sm:$0xff]  ;;  %v81_v1 = vld [vmem:[#allocation2 + $0x8] sm:$0xff]  ;;  %v912_v36 = vmov 0  }
  0x33   :  { %82 = vadd.xlane.f32.xlu0 %v80_v0  ;;  %v712_v2 = vld [vmem:[#allocation5 + $0x74] ss:$8 sps:$4 sm:$0xff]   ;;  %v716_v4 = vld [vmem:[#allocation5 + $0x70] ss:$8 sps:$4 sm:$0xff]   ;;  %v718_v14 = vld [vmem:[#allocation5 + $0x64] ss:$8 sps:$4 sm:$0xff]   ;;  %252 = vmatprep.mubr.bf16.mxu0 %v912_v36 }
  0x34   :  { %v714_v3 = vld [vmem:[#allocation7 + $0x74] ss:$8 sps:$4 sm:$0xff]   ;;  %v717_v5 = vld [vmem:[#allocation7 + $0x70] ss:$8 sps:$4 sm:$0xff]   ;;  %220 = vmatprep.subr.bf16.mxu0 %v712_v2  ;;  %v720_v15 = vld [vmem:[#allocation7 + $0x64] ss:$8 sps:$4 sm:$0xff]   ;;  %391 = vmatprep.mubr.bf16.mxu1 %v912_v36 }
  0x35   :  { %359 = vmatprep.subr.bf16.mxu1 %v714_v3  ;;  %221 = vmatpush1.bf16.msra.mxu0 %v716_v4  ;;  %v722_v16 = vld [vmem:[#allocation5 + $0x60] ss:$8 sps:$4 sm:$0xff]   ;;  %v724_v18 = vld [vmem:[#allocation5 + $0x54] ss:$8 sps:$4 sm:$0xff]   ;;  %v728_v20 = vld [vmem:[#allocation5 + $0x50] ss:$8 sps:$4 sm:$0xff]  }
  0x36   :  { %360 = vmatpush1.bf16.msra.mxu1 %v717_v5  ;;  %v723_v17 = vld [vmem:[#allocation7 + $0x60] ss:$8 sps:$4 sm:$0xff]   ;;  %222 = vmatprep.subr.bf16.mxu0 %v718_v14  ;;  %v726_v19 = vld [vmem:[#allocation7 + $0x54] ss:$8 sps:$4 sm:$0xff]   ;;  %v729_v21 = vld [vmem:[#allocation7 + $0x50] ss:$8 sps:$4 sm:$0xff]  }
  0x37   :  { %84 = vadd.xlane.f32.xlu0 %v81_v1  ;;  %361 = vmatprep.subr.bf16.mxu1 %v720_v15  ;;  %v730_v22 = vld [vmem:[#allocation5 + $0x44] ss:$8 sps:$4 sm:$0xff]   ;;  %v734_v24 = vld [vmem:[#allocation5 + $0x40] ss:$8 sps:$4 sm:$0xff]   ;;  %v736_v26 = vld [vmem:[#allocation5 + $0x34] ss:$8 sps:$4 sm:$0xff]  }
  0x38   :  { %v732_v23 = vld [vmem:[#allocation7 + $0x44] ss:$8 sps:$4 sm:$0xff]   ;;  %v735_v25 = vld [vmem:[#allocation7 + $0x40] ss:$8 sps:$4 sm:$0xff]   ;;  %v738_v27 = vld [vmem:[#allocation7 + $0x34] ss:$8 sps:$4 sm:$0xff]  }
  0x39   :  { %223 = vmatpush1.bf16.msra.mxu0 %v722_v16  ;;  %v740_v28 = vld [vmem:[#allocation5 + $0x30] ss:$8 sps:$4 sm:$0xff]   ;;  %v742_v30 = vld [vmem:[#allocation5 + $0x24] ss:$8 sps:$4 sm:$0xff]   ;;  %v746_v32 = vld [vmem:[#allocation5 + $0x20] ss:$8 sps:$4 sm:$0xff]  }
  0x3a   :  { %362 = vmatpush1.bf16.msra.mxu1 %v723_v17  ;;  %224 = vmatprep.subr.bf16.mxu0 %v724_v18  ;;  %v741_v29 = vld [vmem:[#allocation7 + $0x30] ss:$8 sps:$4 sm:$0xff]   ;;  %v744_v31 = vld [vmem:[#allocation7 + $0x24] ss:$8 sps:$4 sm:$0xff]   ;;  %v747_v33 = vld [vmem:[#allocation7 + $0x20] ss:$8 sps:$4 sm:$0xff]  }
  0x3b   :  { %363 = vmatprep.subr.bf16.mxu1 %v726_v19  ;;  %v748_v34 = vld [vmem:[#allocation5 + $0x14] ss:$8 sps:$4 sm:$0xff]   ;;  %v752_v37 = vld [vmem:[#allocation5 + $0x10] ss:$8 sps:$4 sm:$0xff]   ;;  %v754_v39 = vld [vmem:[#allocation5 + $0x4] ss:$8 sps:$4 sm:$0xff]  }
  0x3c   :  { %v750_v35 = vld [vmem:[#allocation7 + $0x14] ss:$8 sps:$4 sm:$0xff]   ;;  %v753_v38 = vld [vmem:[#allocation7 + $0x10] ss:$8 sps:$4 sm:$0xff]   ;;  %v756_v40 = vld [vmem:[#allocation7 + $0x4] ss:$8 sps:$4 sm:$0xff]  }
  0x3d   :  { %225 = vmatpush1.bf16.msra.mxu0 %v728_v20  ;;  %v758_v41 = vld [vmem:[#allocation5] ss:$8 sps:$4 sm:$0xff]   ;;  %v626_v51 = vld [vmem:[%s993_s1] ss:$0 sm:$0xff]  ;;  %v760_v60 = vld [vmem:[#allocation8 + $0x78] sm:$0xff]   ;;  %s913_s1 = smov [#allocation10]  }
  0x3e   :  { %364 = vmatpush1.bf16.msra.mxu1 %v729_v21  ;;  %226 = vmatprep.subr.bf16.mxu0 %v730_v22  ;;  %v759_v42 = vld [vmem:[#allocation7] ss:$8 sps:$4 sm:$0xff]   ;;  %v627_v55 = vld [vmem:[%s994_s2] ss:$0 sm:$0xff]  ;;  %v761_v61 = vld [vmem:[#allocation8 + $0x38] sm:$0xff]   ;;  %s612_s2 = sshll.u32 %s913_s1, 4  ;;  %s613_s2 = int_to_ptr.vmem [resolvable:$true] %s612_s2 }
  0x3f   :  { %365 = vmatprep.subr.bf16.mxu1 %v732_v23  ;;  %v762_v62 = vld [vmem:[#allocation8 + $0x70] sm:$0xff]   ;;  %v766_v2 = vld [vmem:[#allocation8 + $0x60] sm:$0xff]   ;;  %v768_v4 = vld [vmem:[#allocation8 + $0x58] sm:$0xff]   ;;  %s876_s21 = scalar_lea.vmem %s613_s2, 256  ;;  %p881_p7 = scmp.lt.s32.totalorder %s613_s2, %s613_s2 }
  0x40   :  { %v763_v63 = vld [vmem:[#allocation8 + $0x30] sm:$0xff]   ;;  %v767_v3 = vld [vmem:[#allocation8 + $0x20] sm:$0xff]   ;;  %v769_v5 = vld [vmem:[#allocation8 + $0x18] sm:$0xff]   ;;  %p877_p6 = scmp.ne.s32.totalorder %s613_s2, %s876_s21  ;;  %p882_p8 = scmp.lt.s32.totalorder %s876_s21, %s876_s21 }
  0x41   :  { %227 = vmatpush1.bf16.msra.mxu0 %v734_v24 }
  0x42   :  { %366 = vmatpush1.bf16.msra.mxu1 %v735_v25  ;;  %228 = vmatprep.subr.bf16.mxu0 %v736_v26  ;;  %p883_p9 = por %p882_p8, %p881_p7 }
  0x43   :  { %367 = vmatprep.subr.bf16.mxu1 %v738_v27 }
  0x44   :  { %p884_p10 = pnand %p883_p9, %p877_p6 }
  0x45   :  { %229 = vmatpush1.bf16.msra.mxu0 %v740_v28 }
  0x46   :  { %368 = vmatpush1.bf16.msra.mxu1 %v741_v29  ;;  %230 = vmatprep.subr.bf16.mxu0 %v742_v30 }
  0x47   :  { %369 = vmatprep.subr.bf16.mxu1 %v744_v31 }
  0x49   :  { %231 = vmatpush1.bf16.msra.mxu0 %v746_v32 }
  0x4a   :  { %370 = vmatpush1.bf16.msra.mxu1 %v747_v33  ;;  %232 = vmatprep.subr.bf16.mxu0 %v748_v34 }
  0x4b   :  { %371 = vmatprep.subr.bf16.mxu1 %v750_v35 }
  0x4d   :  { %233 = vmatpush1.bf16.msra.mxu0 %v752_v37 }
  0x4e   :  { %372 = vmatpush1.bf16.msra.mxu1 %v753_v38  ;;  %234 = vmatprep.subr.bf16.mxu0 %v754_v39 }
  0x4f   :  { %373 = vmatprep.subr.bf16.mxu1 %v756_v40 }
  0x51   :  { %235 = vmatpush1.bf16.msra.mxu0 %v758_v41 }
  0x52   :  { %374 = vmatpush1.bf16.msra.mxu1 %v759_v42  ;;  %680 = vmatprep.subr.bf16.mxu0 %v760_v60 }
  0xbc   :  { %v83_v6 = vpop.xlane.xlu0 %82 }
  0xbd   :  { %v87_v7 = vmul.f32 0.0078125, %v83_v6  ;;  %v770_v6 = vld [vmem:[#allocation8 + $0x50] sm:$0xff]  }
  0xbf   :  { %v970_v8 = vsub.f32 %v80_v0, %v87_v7  ;;  %v764_v0 = vld [vmem:[#allocation8 + $0x68] sm:$0xff]   ;;  %v771_v7 = vld [vmem:[#allocation8 + $0x10] sm:$0xff]  }
  0xc0   :  { %v85_v9 = vpop.xlane.xlu0 %84 }
  0xc1   :  { %v88_v10 = vmul.f32 0.0078125, %v85_v9  ;;  %v91_v11 = vmul.f32 %v970_v8, %v970_v8  ;;  %v773_v9 = vld [vmem:[#allocation8 + $0x8] sm:$0xff]  }
  0xc3   :  { %v974_v12 = vsub.f32 %v81_v1, %v88_v10  ;;  %93 = vadd.xlane.f32.xlu1 %v91_v11  ;;  %v765_v1 = vld [vmem:[#allocation8 + $0x28] sm:$0xff]   ;;  %v774_v10 = vld [vmem:[#allocation8 + $0x40] sm:$0xff]  }
  0xc4   :  { %v775_v11 = vld [vmem:[#allocation8] sm:$0xff]  }
  0xc5   :  { %v92_v13 = vmul.f32 %v974_v12, %v974_v12 }
  0xc7   :  { %95 = vadd.xlane.f32.xlu1 %v92_v13 }
 0x14c   :  { %v94_v43 = vpop.xlane.xlu1 %93 }
 0x14d   :  { %v97_v44 = vmul.f32 0.0078125, %v94_v43 }
 0x14f   :  { %v99_v45 = vadd.f32 1e-05, %v97_v44 }
 0x150   :  { %v96_v46 = vpop.xlane.xlu1 %95 }
 0x151   :  { %776 = vrsqrt.f32 %v99_v45  ;;  %v98_v47 = vmul.f32 0.0078125, %v96_v46 }
 0x153   :  { %v100_v48 = vadd.f32 1e-05, %v98_v47 }
 0x155   :  { %778 = vrsqrt.f32 %v100_v48 }
 0x15e   :  { %v777_v49 = vpop.eup %776 }
 0x15f   :  { %v103_v50 = vmul.f32 %v777_v49, %v970_v8  ;;  %v772_v8 = vld [vmem:[#allocation8 + $0x48] sm:$0xff]  }
 0x161   :  { %v112_v54 = vmul.f32 %v626_v51, %v103_v50 }
 0x162   :  { %v779_v52 = vpop.eup %778 }
 0x163   :  { %v104_v53 = vmul.f32 %v779_v52, %v974_v12  ;;  %v121_v57 = vadd.f32 %v627_v55, %v112_v54 }
 0x165   :  { %v113_v56 = vmul.f32 %v626_v51, %v104_v53 }
 0x167   :  { %v122_v58 = vadd.f32 %v627_v55, %v113_v56 }
 0x169   :  { %v123_v59 = vpack.c.bf16 %v122_v58, %v121_v57 }
 0x16b   :  { %253 = vmatmul.mubr.bf16.vlgmr.msra.gmra.mxu0 %v123_v59  ;;  %392 = vmatmul.mubr.bf16.vlgmr.msra.gmra.mxu1 %v123_v59 }
 0x16c   :  { %681 = vmatpush3.bf16.msra.mxu0 %v761_v61 }
 0x16d   :  { %682 = vmatprep.subr.bf16.mxu0 %v762_v62 }
 0x170   :  { %683 = vmatpush3.bf16.msra.mxu0 %v763_v63 }
 0x171   :  { %684 = vmatprep.subr.bf16.mxu0 %v764_v0 }
 0x174   :  { %685 = vmatpush3.bf16.msra.mxu0 %v765_v1 }
 0x175   :  { %686 = vmatprep.subr.bf16.mxu0 %v766_v2 }
 0x178   :  { %687 = vmatpush3.bf16.msra.mxu0 %v767_v3 }
 0x179   :  { %688 = vmatprep.subr.bf16.mxu0 %v768_v4 }
 0x17c   :  { %689 = vmatpush3.bf16.msra.mxu0 %v769_v5 }
 0x17d   :  { %690 = vmatprep.subr.bf16.mxu0 %v770_v6 }
 0x180   :  { %691 = vmatpush3.bf16.msra.mxu0 %v771_v7 }
 0x181   :  { %692 = vmatprep.subr.bf16.mxu0 %v772_v8 }
 0x184   :  { %693 = vmatpush3.bf16.msra.mxu0 %v773_v9 }
 0x185   :  { %694 = vmatprep.subr.bf16.mxu0 %v774_v10 }
 0x188   :  { %695 = vmatpush3.bf16.msra.mxu0 %v775_v11 }
 0x22b   :  { %v393_v12 = vpop.f32.mrf.mxu1  ;;  %v254_v28 = vpop.f32.mrf.mxu0 }
 0x22c   :  { %v660_v13 = vmul.f32 -1.442695, %v393_v12 }
 0x22d   :  { %v395_v14 = vpop.f32.mrf.mxu1  ;;  %v256_v29 = vpop.f32.mrf.mxu0 }
 0x22e   :  { %780 = vpow2.f32 %v660_v13  ;;  %v661_v15 = vmul.f32 -1.442695, %v395_v14 }
 0x22f   :  { %v397_v16 = vpop.f32.mrf.mxu1  ;;  %v258_v33 = vpop.f32.mrf.mxu0 }
 0x230   :  { %782 = vpow2.f32 %v661_v15  ;;  %v662_v17 = vmul.f32 -1.442695, %v397_v16 }
 0x231   :  { %v399_v18 = vpop.f32.mrf.mxu1  ;;  %v260_v40 = vpop.f32.mrf.mxu0 }
 0x232   :  { %784 = vpow2.f32 %v662_v17  ;;  %v663_v19 = vmul.f32 -1.442695, %v399_v18 }
 0x234   :  { %786 = vpow2.f32 %v663_v19 }
 0x23b   :  { %v781_v20 = vpop.eup %780 }
 0x23c   :  { %v414_v22 = vadd.f32 1.0, %v781_v20 }
 0x23d   :  { %v783_v21 = vpop.eup %782 }
 0x23e   :  { %v415_v23 = vadd.f32 1.0, %v783_v21 }
 0x23f   :  { %v785_v24 = vpop.eup %784 }
 0x240   :  { %788 = vrcp.f32 %v415_v23  ;;  %v416_v25 = vadd.f32 1.0, %v785_v24 }
 0x241   :  { %v787_v26 = vpop.eup %786  ;;  %790 = vrcp.f32 %v414_v22 }
 0x242   :  { %792 = vrcp.f32 %v416_v25  ;;  %v417_v27 = vadd.f32 1.0, %v787_v26 }
 0x244   :  { %794 = vrcp.f32 %v417_v27 }
 0x24d   :  { %v789_v30 = vpop.eup %788 }
 0x24e   :  { %v791_v31 = vpop.eup %790  ;;  %v427_v34 = vmul.f32 %v789_v30, %v395_v14 }
 0x24f   :  { %v793_v32 = vpop.eup %792  ;;  %v426_v37 = vmul.f32 %v791_v31, %v393_v12 }
 0x250   :  { %v428_v35 = vmul.f32 %v793_v32, %v397_v16  ;;  %v431_v41 = vmul.f32 %v427_v34, %v256_v29 }
 0x251   :  { %v795_v36 = vpop.eup %794  ;;  %v430_v43 = vmul.f32 %v426_v37, %v254_v28 }
 0x252   :  { %v429_v38 = vmul.f32 %v795_v36, %v399_v18  ;;  %v432_v39 = vmul.f32 %v428_v35, %v258_v33 }
 0x254   :  { %v433_v42 = vmul.f32 %v429_v38, %v260_v40  ;;  %v434_v45 = vpack.c.bf16 %v432_v39, %v430_v43 }
 0x256   :  { %v435_v44 = vpack.c.bf16 %v433_v42, %v431_v41 }
 0x258   :  { %596 = vmatprep.mubr.bf16.mxu0 %v435_v44 }
 0x259   :  { %597 = vmatmul.mubr.bf16.vlgmr.msra.gmra.mxu0 %v434_v45 }
 0x319   :  { %v696_v46 = vpop.f32.mrf.mxu0 }
 0x31b   :  { %v697_v47 = vpop.f32.mrf.mxu0 }
 0x31c   :  { %v698_v48 = vadd.f32 %v697_v47, %v696_v46 }
 0x31d   :  { %v699_v49 = vpop.f32.mrf.mxu0 }
 0x31e   :  { %605 = vst [vmem:[#allocation10] sm:$0xff] %v698_v48 }
 0x31f   :  { %v700_v50 = vpop.f32.mrf.mxu0 }
 0x320   :  { %v701_v51 = vadd.f32 %v700_v50, %v699_v49 }
 0x322   :  { %606 = vst [vmem:[#allocation10 + $0x8] sm:$0xff] %v701_v51 }
 0x323   :  { %887 = shalt.err (!%p884_p10)
}
 0x324   :  { %618 = dma.vmem_to_hbm [thread:$0]  %s613_s2, 256, %s998_s6, [#allocation4], %s906_s26, %s906_s26, %s907_s27  }
 0x325   :  { %902 = dma.done.wait [#allocation4], 256  }
 0x326   :  { %903 = vsyncadd [#allocation4], 4294967040 }
 0x327   :  { %622 = vsyncpa [#allocation3], 1 }
 0x328   :  { %623 = vsyncpa [#allocation6], 1 }
 0x329   :  { %624 = vsyncpa [#allocation9], 1 }
 0x32a   :  { %625 = vsyncpa [#allocation4], 1 }

</bundles_post_ra>
